<compile_context>
chip_gen: v5e
topology: v5e:2x2
jax: 0.10.0
libtpu: 0.0.40
codegen_flags: <defaults>
</compile_context>

<pallas_src>
import functools

import jax
import jax.numpy as jnp
from jax.experimental import pallas as pl
from jax.experimental.pallas import tpu as pltpu


def _round_up(x, m):
    return ((x + m - 1) // m) * m


def _vmem_capacity_bytes():
    """Best-effort physical VMEM capacity; conservative fallbacks."""
    try:
        return int(pltpu.get_tpu_info().vmem_capacity_bytes)
    except Exception:
        pass
    try:
        kind = jax.devices()[0].device_kind.lower()
        if "v7" in kind:
            return 64 * 1024 * 1024
        return 128 * 1024 * 1024
    except Exception:
        return 64 * 1024 * 1024


def _device_has_bf16_vector_units():
    """bf16 VPU/EUP exists on v6e/v7x; v5e and older lack it."""
    try:
        kind = jax.devices()[0].device_kind.lower()
        return ("v6" in kind) or ("v7" in kind)
    except Exception:
        return False


def _contrastive_head_kernel(pos_ref, neg_ref, partial_ref, *,
                             inv_temperature, n_rows, row_tile, bf16_compute):
    i = pl.program_id(0)

    # --- K-wide part: pos-free (m, s) from neg alone --------------------
    if bf16_compute:
        # bf16 scale / max / exp (bf16 VALU + EUP), f32 accumulation.
        scaled = neg_ref[...] * inv_temperature                      # (TM, K) bf16
        m = jnp.max(scaled, axis=-1, keepdims=True)                  # (TM, 1) bf16
        e = jnp.exp(scaled - m)                                      # bf16 EUP
        s = jnp.sum(e.astype(jnp.float32), axis=-1, keepdims=True)   # (TM, 1) f32
        m = m.astype(jnp.float32)
    else:
        scaled = neg_ref[...].astype(jnp.float32) * inv_temperature  # (TM, K) f32
        m = jnp.max(scaled, axis=-1, keepdims=True)                  # (TM, 1)
        s = jnp.sum(jnp.exp(scaled - m), axis=-1, keepdims=True)     # (TM, 1)

    # --- per-row f32 epilogue: fold in the positive logit ---------------
    p = pos_ref[...].astype(jnp.float32) * inv_temperature           # (TM, 1)
    big = jnp.maximum(p, m)                                          # overall row max
    per_row = big + jnp.log(jnp.exp(p - big) + jnp.exp(m - big) * s) - p

    # Mask rows of the last (partial) tile that fall past N.  Must stay a
    # select (jnp.where) so NaN/Inf garbage from out-of-range rows is dropped.
    row_ids = jax.lax.broadcasted_iota(jnp.int32, (row_tile, 1), 0) + i * row_tile
    per_row = jnp.where(row_ids < n_rows, per_row, 0.0)

    # Per-tile partial sum, broadcast over a lane-dense (1, 8, 128) block.
    partial_ref[...] = jnp.broadcast_to(jnp.sum(per_row), partial_ref.shape)


def contrastive_head_loss(pos, neg, temperature=0.1, row_tile=None):
    """Pallas implementation of ContrastiveHead.forward.

    Args:
      pos: (N, 1) array of positive similarities (f32 or bf16).
      neg: (N, K) array of negative similarities (f32 or bf16).
      temperature: softmax temperature (static Python float).
      row_tile: optional row-tile override (rounded to the sublane multiple).

    Returns:
      dict with key 'loss' holding a scalar float32 loss.
    """
    assert pos.ndim == 2 and pos.shape[1] == 1, "pos must be (N, 1)"
    assert neg.ndim == 2 and neg.shape[0] == pos.shape[0], "neg must be (N, K)"

    n, k = neg.shape
    neg_itemsize = jnp.dtype(neg.dtype).itemsize
    pos_itemsize = jnp.dtype(pos.dtype).itemsize

    # Tiny K: pad to one full 128-lane vreg with -inf (exp -> 0, max unchanged)
    # so the kernel does not run at reduced lane density.  Larger K with a
    # 128-remainder is left alone: a wrapper-side pad would cost a full extra
    # HBM round trip of neg, worse than some wasted lanes for a mem-bound kernel.
    k_eff = k
    if k < 128:
        k_eff = 128
        neg = jnp.concatenate(
            [neg, jnp.full((n, k_eff - k), -jnp.inf, dtype=neg.dtype)], axis=1)

    # Sublane multiple: 8 for f32, 16 for bf16 (packed sublanes).
    sub = 8 * max(1, 4 // max(1, min(neg_itemsize, pos_itemsize)))
    n_pad = _round_up(n, sub)

    # Device-aware VMEM budgets (review: ~4 MiB/buffer + 48 MiB limit on
    # 64-MiB-VMEM chips (v7x); ~8 MiB/buffer + 64 MiB limit on 128-MiB chips).
    vmem = _vmem_capacity_bytes()
    per_buf_budget = max(1 * 1024 * 1024, min(8 * 1024 * 1024, vmem // 16))
    vmem_limit = max(16 * 1024 * 1024, min(64 * 1024 * 1024, (vmem * 3) // 4))

    # Size the tile by bytes: neg row + the 128-lane-padded pos row (512 B/row
    # of VMEM) both count against the per-buffer budget.  No hard row clamp.
    bytes_per_row = k_eff * neg_itemsize + 128 * 4
    if row_tile is None:
        row_tile = per_buf_budget // bytes_per_row
    row_tile = int(row_tile)
    row_tile = min(row_tile, n_pad)
    if n >= 512:
        # Keep >= 2 grid steps so both v7x TensorCores get work.
        row_tile = min(row_tile, _round_up(-(-n_pad // 2), sub))
    row_tile = max(sub, (row_tile // sub) * sub)

    num_tiles = pl.cdiv(n, row_tile)

    bf16_compute = (jnp.dtype(neg.dtype) == jnp.dtype(jnp.bfloat16)
                    and _device_has_bf16_vector_units())

    kernel = functools.partial(
        _contrastive_head_kernel,
        inv_temperature=1.0 / temperature,
        n_rows=n,
        row_tile=row_tile,
        bf16_compute=bf16_compute,
    )

    cost = pl.CostEstimate(
        flops=int(3 * n * k_eff + 8 * n),
        transcendentals=int(n * k_eff + 3 * n),
        bytes_accessed=int(n * k_eff * neg_itemsize + n * pos_itemsize
                           + num_tiles * 8 * 128 * 4),
    )

    partials = pl.pallas_call(
        kernel,
        out_shape=jax.ShapeDtypeStruct((num_tiles, 8, 128), jnp.float32),
        grid=(num_tiles,),
        in_specs=[
            pl.BlockSpec((row_tile, 1), lambda i: (i, 0)),       # pos rows
            pl.BlockSpec((row_tile, k_eff), lambda i: (i, 0)),   # neg rows
        ],
        out_specs=pl.BlockSpec((1, 8, 128), lambda i: (i, 0, 0)),
        compiler_params=pltpu.CompilerParams(
            dimension_semantics=("parallel",),
            vmem_limit_bytes=int(vmem_limit),
        ),
        cost_estimate=cost,
    )(pos, neg)

    # Dense final reduction (each (1,8,128) block is filled with its tile's
    # row-sum, so divide by N * 1024).  No strided [:,0,0] gather.
    loss = jnp.sum(partials) / jnp.float32(n * 8 * 128)
    return {"loss": loss}


def _reference_loss(pos, neg, temperature=0.1):
    """Pure-JAX reference (mirrors torch CrossEntropyLoss with zero labels)."""
    logits = jnp.concatenate([pos, neg], axis=1).astype(jnp.float32) / temperature
    lse = jax.nn.logsumexp(logits, axis=1)
    return jnp.mean(lse - logits[:, 0])


if __name__ == "__main__":
    key = jax.random.PRNGKey(0)
    k1, k2, k3, k4, k5, k6 = jax.random.split(key, 6)

    # Check 1: tiny shapes matching the module docstring (N x 1 pos, N x k neg).
    N, K = 8, 16
    pos = jax.random.normal(k1, (N, 1), dtype=jnp.float32)
    neg = jax.random.normal(k2, (N, K), dtype=jnp.float32)
    loss = jax.block_until_ready(
        contrastive_head_loss(pos, neg, temperature=0.1)["loss"])
    ref = jax.block_until_ready(_reference_loss(pos, neg, temperature=0.1))
    assert jnp.allclose(loss, ref, rtol=1e-4, atol=1e-4), (loss, ref)

    # Check 2: multi-tile grid with a ragged tail (exercises row masking and
    # the pipelined / parallel grid path) using an explicit small row_tile.
    N2, K2 = 300, 256
    pos2 = jax.random.normal(k3, (N2, 1), dtype=jnp.float32)
    neg2 = jax.random.normal(k4, (N2, K2), dtype=jnp.float32)
    loss2 = jax.block_until_ready(
        contrastive_head_loss(pos2, neg2, temperature=0.1, row_tile=128)["loss"])
    ref2 = jax.block_until_ready(_reference_loss(pos2, neg2, temperature=0.1))
    assert jnp.allclose(loss2, ref2, rtol=1e-4, atol=1e-4), (loss2, ref2)

    # Check 3: bf16 inputs — exercises the bf16 compute fast path on v6e/v7x
    # (f32-upcast fallback elsewhere).  Looser tolerance for bf16 scale/exp.
    N3, K3 = 512, 384
    pos3 = jax.random.normal(k5, (N3, 1), dtype=jnp.float32).astype(jnp.bfloat16)
    neg3 = jax.random.normal(k6, (N3, K3), dtype=jnp.float32).astype(jnp.bfloat16)
    loss3 = jax.block_until_ready(
        contrastive_head_loss(pos3, neg3, temperature=0.1)["loss"])
    ref3 = jax.block_until_ready(
        _reference_loss(pos3.astype(jnp.float32), neg3.astype(jnp.float32), 0.1))
    assert jnp.allclose(loss3, ref3, rtol=2e-2, atol=2e-1), (loss3, ref3)

    print("KERNEL_OK")
</pallas_src>

<mosaic_0001>
module attributes {stable_mosaic.version = 11 : i64} {
  func.func @_contrastive_head_kernel(%arg0: i32, %arg1: memref<8x1xf32, #tpu.memory_space<vmem>>, %arg2: memref<8x128xf32, #tpu.memory_space<vmem>>, %arg3: memref<1x8x128xf32, #tpu.memory_space<vmem>>) attributes {dimension_semantics = [#tpu.dimension_semantics<parallel>], iteration_bounds = array<i64: 1>, scalar_prefetch = 0 : i64, scratch_operands = 0 : i64, tpu.core_type = #tpu.core_type<tc>, window_params = [{transform_indices = @transform_0, window_bounds = array<i64: 8, 1>}, {transform_indices = @transform_1, window_bounds = array<i64: 8, 128>}, {transform_indices = @transform_2, window_bounds = array<i64: 1, 8, 128>}]} {
    %c0 = arith.constant 0 : index
    %c0_0 = arith.constant 0 : index
    %0 = vector.load %arg2[%c0, %c0_0] : memref<8x128xf32, #tpu.memory_space<vmem>>, vector<8x128xf32>
    %cst = arith.constant 1.000000e+01 : f32
    %1 = vector.broadcast %cst : f32 to vector<8x128xf32>
    %2 = arith.mulf %0, %1 : vector<8x128xf32>
    %cst_1 = arith.constant dense<0xFF800000> : vector<8xf32>
    %3 = vector.multi_reduction <maximumf>, %2, %cst_1 [1] : vector<8x128xf32> to vector<8xf32>
    %4 = vector.shape_cast %3 : vector<8xf32> to vector<8x1xf32>
    %5 = vector.broadcast %4 : vector<8x1xf32> to vector<8x128xf32>
    %6 = arith.subf %2, %5 : vector<8x128xf32>
    %7 = math.exp %6 : vector<8x128xf32>
    %cst_2 = arith.constant dense<0.000000e+00> : vector<8xf32>
    %8 = vector.multi_reduction <add>, %7, %cst_2 [1] : vector<8x128xf32> to vector<8xf32>
    %9 = vector.shape_cast %8 : vector<8xf32> to vector<8x1xf32>
    %c0_3 = arith.constant 0 : index
    %c0_4 = arith.constant 0 : index
    %10 = vector.load %arg1[%c0_3, %c0_4] : memref<8x1xf32, #tpu.memory_space<vmem>>, vector<8x1xf32>
    %cst_5 = arith.constant 1.000000e+01 : f32
    %11 = vector.broadcast %cst_5 : f32 to vector<8x1xf32>
    %12 = arith.mulf %10, %11 : vector<8x1xf32>
    %13 = arith.maximumf %12, %4 : vector<8x1xf32>
    %14 = arith.subf %12, %13 : vector<8x1xf32>
    %15 = math.exp %14 : vector<8x1xf32>
    %16 = arith.subf %4, %13 : vector<8x1xf32>
    %17 = math.exp %16 : vector<8x1xf32>
    %18 = arith.mulf %17, %9 : vector<8x1xf32>
    %19 = arith.addf %15, %18 : vector<8x1xf32>
    %20 = math.log %19 : vector<8x1xf32>
    %21 = arith.addf %13, %20 : vector<8x1xf32>
    %22 = arith.subf %21, %12 : vector<8x1xf32>
    %23 = tpu.iota {dimensions = array<i32: 0>} : vector<8x1xi32>
    %c8_i32 = arith.constant 8 : i32
    %24 = arith.muli %arg0, %c8_i32 : i32
    %25 = vector.broadcast %24 : i32 to vector<8x1xi32>
    %26 = arith.addi %23, %25 : vector<8x1xi32>
    %c8_i32_6 = arith.constant 8 : i32
    %27 = vector.broadcast %c8_i32_6 : i32 to vector<8x1xi32>
    %28 = arith.cmpi slt, %26, %27 : vector<8x1xi32>
    %cst_7 = arith.constant 0.000000e+00 : f32
    %29 = vector.broadcast %cst_7 : f32 to vector<8x1xf32>
    %30 = arith.select %28, %22, %29 : vector<8x1xi1>, vector<8x1xf32>
    %31 = vector.shape_cast %30 : vector<8x1xf32> to vector<1x8x1xf32>
    %cst_8 = arith.constant dense<0.000000e+00> : vector<1xf32>
    %32 = vector.multi_reduction <add>, %31, %cst_8 [1, 2] : vector<1x8x1xf32> to vector<1xf32>
    %33 = vector.shape_cast %32 : vector<1xf32> to vector<1x1x1xf32>
    %34 = vector.extract %33[0, 0, 0] : f32 from vector<1x1x1xf32>
    %35 = vector.broadcast %34 : f32 to vector<1x8x128xf32>
    %c0_9 = arith.constant 0 : index
    %c0_10 = arith.constant 0 : index
    %c0_11 = arith.constant 0 : index
    %36 = vector.load %arg3[%c0_9, %c0_10, %c0_11] : memref<1x8x128xf32, #tpu.memory_space<vmem>>, vector<1x8x128xf32>
    tpu.vector_store %arg3[%c0_9, %c0_10, %c0_11], %35 {strides = array<i32>} : memref<1x8x128xf32, #tpu.memory_space<vmem>>, vector<1x8x128xf32>,
    return
  }
  func.func @transform_0(%arg0: i32) -> (i32, i32) {
    %c0_i32 = arith.constant 0 : i32
    %c0_i32_0 = arith.constant 0 : i32
    return %arg0, %c0_i32 : i32, i32
  }
  func.func @transform_1(%arg0: i32) -> (i32, i32) {
    %c0_i32 = arith.constant 0 : i32
    %c0_i32_0 = arith.constant 0 : i32
    return %arg0, %c0_i32 : i32, i32
  }
  func.func @transform_2(%arg0: i32) -> (i32, i32, i32) {
    %c0_i32 = arith.constant 0 : i32
    %c0_i32_0 = arith.constant 0 : i32
    %c0_i32_1 = arith.constant 0 : i32
    return %arg0, %c0_i32, %c0_i32_0 : i32, i32, i32
  }
}

</mosaic_0001>

<bundles_post_ra>
// kernel: tpu_custom_call.1
= control target key start
LH: loop header
LB: loop body
LE: loop exit
PB: predicated region body
PF: predicated region fallthrough
CT: control target
= control target key end

     0   :  { %s134_s0 = inlined_call_operand.vmem [shape: f32[8,1], index: 0, kind: input, shape index: {}]   ;;  %s135_s1 = inlined_call_operand.vmem [shape: f32[8,128], index: 1, kind: input, shape index: {}]   ;;  %s136_s2 = inlined_call_operand.hbm [shape: f32[1,8,128], index: 2, kind: output, shape index: {}]  }
   0x1   :  { %v12_v0 = vld [vmem:[%s135_s1] sm:$0xff] }
   0x2   :  { %7 = vsyncpa [#allocation3], 0  ;;  %v13_v1 = vmul.f32 10.0, %v12_v0  ;;  %v21_v6 = vld [vmem:[%s134_s0] sm:$0xff]  ;;  %vm43_vm0 = vcmask 7168   ;;  %s109_s0 = smov [#allocation2]  }
   0x3   :  { %v22_v7 = vmul.f32 10.0, %v21_v6  ;;  %s61_s1 = sshll.u32 %s109_s0, 4  ;;  %s63_s15 = sshll.u32 %s136_s2, 4  ;;  %s62_s1 = int_to_ptr.vmem [resolvable:$true] %s61_s1  ;;  %s64_s15 = int_to_ptr.hbm [resolvable:$true] %s63_s15 }
   0x4   :  { %14 = vmax.xlane.f32.xlu0 %v13_v1 }
  0x77   :  { %v15_v2 = vpop.xlane.xlu0 %14 }
  0x78   :  { %v16_v3 = vsub.f32 %v13_v1, %v15_v2  ;;  %v23_v8 = vmax.f32 %v22_v7, %v15_v2 }
  0x7a   :  { %v17_v4 = vmul.f32 1.442695, %v16_v3  ;;  %v27_v9 = vsub.f32 %v15_v2, %v23_v8  ;;  %v24_v10 = vsub.f32 %v22_v7, %v23_v8 }
  0x7c   :  { %75 = vpow2.f32 %v17_v4  ;;  %v28_v11 = vmul.f32 1.442695, %v27_v9  ;;  %v25_v12 = vmul.f32 1.442695, %v24_v10 }
  0x7e   :  { %77 = vpow2.f32 %v28_v11 }
  0x7f   :  { %79 = vpow2.f32 %v25_v12 }
  0x82   :  { %v76_v5 = vpop.eup %75 }
  0x83   :  { %19 = vadd.xlane.f32.xlu0 %v76_v5 }
  0x84   :  { %v78_v13 = vpop.eup %77 }
  0x85   :  { %v80_v16 = vpop.eup %79 }
  0xf6   :  { %v20_v14 = vpop.xlane.xlu0 %19 }
  0xf7   :  { %v30_v15 = vmul.f32 %v78_v13, %v20_v14 }
  0xf9   :  { %v31_v17 = vadd.f32 %v80_v16, %v30_v15 }
  0xfb   :  { %81 = vlog2.f32 %v31_v17 }
 0x101   :  { %v82_v18 = vpop.eup %81 }
 0x102   :  { %v33_v19 = vmul.f32 0.6931472, %v82_v18 }
 0x104   :  { %v34_v20 = vadd.f32 %v33_v19, %v23_v8 }
 0x106   :  { %v35_v21 = vsub.f32 %v34_v20, %v22_v7 }
 0x108   :  { %v44_v22 = vsel %vm43_vm0, %v35_v21, 0.0 }
 0x109   :  { %45 = vadd.xlane.f32.xlu1 %v44_v22 }
 0x17c   :  { %v46_v23 = vpop.xlane.xlu1 %45 }
 0x17d   :  { %v47_v24 = vrot.slane %v46_v23, 4 }
 0x17f   :  { %v48_v25 = vadd.f32 %v47_v24, %v46_v23 }
 0x181   :  { %v49_v26 = vrot.slane %v48_v25, 2 }
 0x183   :  { %v50_v27 = vadd.f32 %v49_v26, %v48_v25 }
 0x185   :  { %v51_v28 = vrot.slane %v50_v27, 1 }
 0x187   :  { %v52_v29 = vadd.f32 %v51_v28, %v50_v27 }
 0x189   :  { %72 = vpush %v52_v29 }
 0x1ba   :  { %s73_s16 = spop %72 }
 0x1bb   :  { %v54_v30 = vstv %s73_s16 }
 0x1bc   :  { %55 = vst [vmem:[#allocation2] sm:$0xff] %v54_v30 }
 0x1bd   :  { %66 = dma.vmem_to_hbm [thread:$0]  %s62_s1, 128, %s64_s15, [#allocation3]  }
 0x1be   :  { %107 = dma.done.wait [#allocation3], 128  }
 0x1bf   :  { %108 = vsyncadd [#allocation3], 4294967168 }
 0x1c0   :  { %71 = vsyncpa [#allocation3], 1 }

</bundles_post_ra>
